<compile_context>
chip_gen: v7x
topology: tpu7x:2x2x1
jax: 0.10.0
libtpu: 0.0.40
codegen_flags: <defaults>
</compile_context>

<pallas_src>
from functools import partial

import numpy as np
import jax
import jax.numpy as jnp
from jax.experimental import pallas as pl
from jax.experimental.pallas import tpu as pltpu


_DEFAULT_TN = 32768          # samples per block along the 128-lane axis
_MAX_BLOCK_BYTES = 4 << 20   # cap a single logits block at 4 MiB


def _round_up(x, m):
    return ((x + m - 1) // m) * m


def _mpu_partial_kernel(x_ref,        # VMEM (Cpad, TN) f32 : logits^T tile (pad = -1e30)
                        lab_ref,      # VMEM (1, TN)   i32 : labels tile
                        out_ref,      # VMEM (Cpad, 128) f32 : resident per-class partials
                        *, num_class, n_real, block_n, need_mask):
    i = pl.program_id(0)

    @pl.when(i == 0)
    def _init():
        out_ref[...] = jnp.zeros_like(out_ref)

    x = x_ref[...]                                        # (Cpad, TN)
    lab = lab_ref[...]                                    # (1, TN)
    c_pad, tn = x.shape

    # ---- P / U / validity masks along the sample (lane) axis --------------
    if need_mask:
        lane = jax.lax.broadcasted_iota(jnp.int32, (1, tn), 1)
        valid = jnp.where(lane < (n_real - i * block_n), 1.0, 0.0)
    else:
        valid = 1.0                                       # full tile, no mask work
    is_p = jnp.where(lab <= num_class - 1, valid, 0.0)    # (1, TN)
    is_u = valid - is_p                                   # (1, TN)

    # ---- softmax pieces (class axis = sublanes): only 2 sublane reductions --
    m = jnp.max(x, axis=0, keepdims=True)                 # (1, TN)   XLU
    e = jnp.exp(x - m)                                    # (Cpad,TN) EUP
    s = jnp.sum(e, axis=0, keepdims=True)                 # (1, TN)   XLU
    log_s = jnp.log(s)                                    # (1, TN)   EUP
    # log(1 - softmax + 0.01) without any per-sample divide:
    lg = jnp.log(1.01 * s - e) - log_s                    # (Cpad,TN) EUP

    crow = jax.lax.broadcasted_iota(jnp.int32, (c_pad, 1), 0)
    onehot = crow == lab                                  # (Cpad, TN)

    a_u = lg * is_u                                       # U-weighted log terms
    a_p = lg * is_p                                       # P-weighted log terms
    a_2 = jnp.where(onehot, a_p, 0.0)                     # label-selected (pu2)
    a_x = jnp.where(onehot, x, 0.0) * is_p                # label-selected logits (CE)

    # ---- reduce over the SAMPLE (lane) axis into per-class columns ---------
    cu = jnp.sum(a_u, axis=1, keepdims=True)              # (Cpad, 1)
    cp = jnp.sum(a_p, axis=1, keepdims=True)              # (Cpad, 1)
    c2 = jnp.sum(a_2, axis=1, keepdims=True)              # (Cpad, 1)
    cx = jnp.sum(a_x, axis=1, keepdims=True)              # (Cpad, 1)
    pz = jnp.sum((m + log_s) * is_p, keepdims=True)       # (1, 1) sum_P logsumexp
    npos = jnp.sum(is_p, keepdims=True)                   # (1, 1) #positives

    # ---- one unmasked read-modify-write of the resident output block -------
    lanec = jax.lax.broadcasted_iota(jnp.int32, out_ref.shape, 1)
    upd = (jnp.where(lanec == 0, cu, 0.0)
           + jnp.where(lanec == 1, cp, 0.0)
           + jnp.where(lanec == 2, c2, 0.0)
           + jnp.where(lanec == 3, cx, 0.0)
           + jnp.where(lanec == 4, pz, 0.0)
           + jnp.where(lanec == 5, npos, 0.0))
    out_ref[...] += upd


@partial(jax.jit, static_argnames=("indexlist", "num_class", "block_n"))
def mpu_loss_index(outputs, labels, priorlist, indexlist, num_class, puW,
                   block_n=None):
    """Pallas implementation of MPULoss_INDEX.forward.

    Returns (objective, PULoss * puW, crossloss); objective == crossloss,
    matching the PyTorch module.  `indexlist` must be a tuple of ints.
    """
    outputs = jnp.asarray(outputs, jnp.float32)
    n, c = outputs.shape
    k = int(num_class)
    idx = tuple(int(v) for v in indexlist)
    l = len(idx)

    # ---- tiling (lane-dense: samples on the 128-lane axis) -----------------
    c_pad = max(8, _round_up(c, 8))
    if block_n is None:
        tn = min(_DEFAULT_TN, _round_up(max(n, 1), 128))
    else:
        tn = _round_up(int(block_n), 128)
    tn = min(tn, max(128, (_MAX_BLOCK_BYTES // (4 * c_pad)) // 128 * 128))
    n_tiles = -(-n // tn)
    n_pad = n_tiles * tn
    need_mask = (n_pad != n)

    # Single fused pad-of-transpose (no fill + dynamic-update-slice pass).
    x_t = jax.lax.pad(outputs.T, np.float32(-1e30),
                      ((0, c_pad - c, 0), (0, n_pad - n, 0)))
    lab = jax.lax.pad(jnp.asarray(labels, jnp.int32).reshape(1, n),
                      np.int32(0), ((0, 0, 0), (0, n_pad - n, 0)))

    kernel = partial(_mpu_partial_kernel, num_class=k, n_real=n,
                     block_n=tn, need_mask=need_mask)

    grid_spec = pltpu.PrefetchScalarGridSpec(
        num_scalar_prefetch=0,
        grid=(n_tiles,),
        in_specs=[pl.BlockSpec((c_pad, tn), lambda i: (0, i)),   # logits^T
                  pl.BlockSpec((1, tn), lambda i: (0, i))],      # labels
        out_specs=pl.BlockSpec((c_pad, 128), lambda i: (0, 0)),  # resident partials
    )

    elems = c_pad * n_pad
    cost = pl.CostEstimate(
        flops=24 * elems,
        transcendentals=2 * elems + 2 * n_pad,
        bytes_accessed=4 * (elems + n_pad + c_pad * 128),
    )

    partial_sums = pl.pallas_call(
        kernel,
        out_shape=jax.ShapeDtypeStruct((c_pad, 128), jnp.float32),
        grid_spec=grid_spec,
        compiler_params=pltpu.CompilerParams(
            dimension_semantics=("arbitrary",),
            vmem_limit_bytes=32 * 1024 * 1024,
        ),
        cost_estimate=cost,
    )(x_t, lab)

    # ---- tiny per-class weightings + scalar finalisation in the wrapper ----
    prior_full = jnp.zeros((c_pad,), jnp.float32).at[:c].set(
        jnp.asarray(priorlist, jnp.float32).reshape(-1)[:c])
    wu_np = np.zeros((c_pad,), np.float32)   # class in indexlist (and < K)
    wp_np = np.zeros((c_pad,), np.float32)   # class < K, not in indexlist
    for cls in range(k):
        if cls in idx:
            wu_np[cls] = 1.0
        else:
            wp_np[cls] = 1.0
    wu = jnp.asarray(wu_np)
    wp = jnp.asarray(wp_np)

    cu = partial_sums[:, 0]      # per-class  sum over U of  log(1.01 - p)
    cp = partial_sums[:, 1]      # per-class  sum over P of  log(1.01 - p)
    c2 = partial_sums[:, 2]      # per-class  sum over P of  onehot * log(1.01 - p)
    cx = partial_sums[:, 3]      # per-class  sum over P of  onehot * logits
    pz = partial_sums[0, 4]      # sum over P of logsumexp(logits)
    n_p = partial_sums[0, 5]

    sum_ui = -jnp.dot(wu, cu)          # Sum_U Sum_{i in indexlist} -log(1 - p_i + .01)
    sum_pn = -jnp.dot(wp, cp)          # Sum_P Sum_{i<K, not in indexlist} ...
    sum_p2 = -jnp.dot(prior_full, c2)  # Sum_P prior[label] * -log(1 - p_label + .01)
    sum_ce = pz - jnp.sum(cx)          # Sum_P (logsumexp - logit[label])
    n_u = jnp.float32(n) - n_p

    denom_p = jnp.maximum(n_p, 1.0)
    denom_u = jnp.maximum(n_u, 1.0)
    prior0 = jnp.asarray(priorlist, jnp.float32).reshape(-1)[idx[0]]

    pu3 = sum_ui / (denom_u * float(l))
    pu1 = sum_pn * prior0 / (denom_p * float(k - l))   # matches reference (no guard on K-L)
    puloss = (pu1 + pu3 - sum_p2 / denom_p) * puW
    # nn.CrossEntropyLoss mean over positives (NaN when there are none,
    # exactly like the PyTorch module).
    crossloss = sum_ce / n_p
    return crossloss, puloss.reshape(1), crossloss


def _reference_forward(outputs, labels, priorlist, indexlist, K, puW):
    """Faithful numpy re-implementation of the PyTorch forward (for checking)."""
    outputs = np.asarray(outputs, np.float32)
    labels = np.asarray(labels)
    priorlist = np.asarray(priorlist, np.float32)
    xm = outputs - outputs.max(axis=1, keepdims=True)
    soft = np.exp(xm) / np.exp(xm).sum(axis=1, keepdims=True)

    P = np.nonzero(labels <= K - 1)[0]
    U = np.nonzero(labels > K - 1)[0]
    labelsP = labels[P]
    outP, softP = outputs[P], soft[P]
    outU, softU = outputs[U], soft[U]
    L = len(indexlist)

    PULoss = 0.0
    for i in range(K):
        if i in indexlist:
            PULoss += np.sum(-np.log(1 - softU[:, i] + 0.01)) / max(1, outU.shape[0]) / L
        else:
            PULoss += (np.sum(-np.log(1 - softP[:, i] + 0.01))
                       * priorlist[indexlist[0]] / max(1, outP.shape[0]) / (K - L))
    pu2 = 0.0
    for row, lab in enumerate(labelsP):
        pu2 += -np.log(1 - softP[row, lab] + 0.01) * priorlist[lab]
    PULoss -= pu2 / max(1, outP.shape[0])

    mx = outP.max(axis=1, keepdims=True)
    logZ = (np.log(np.exp(outP - mx).sum(axis=1, keepdims=True)) + mx).reshape(-1)
    ce = float(np.mean(logZ - outP[np.arange(len(labelsP)), labelsP]))
    return ce, PULoss * puW, ce


if __name__ == "__main__":
    key = jax.random.PRNGKey(0)
    k1, k2, k3 = jax.random.split(key, 3)
    puW = 0.5

    # ---- case 1: tiny shapes from the module spec (8 samples, 5 logits, K=4)
    N, C, K = 8, 5, 4
    indexlist = (0, 2)
    outputs = jax.random.normal(k1, (N, C), dtype=jnp.float32)
    labels = jnp.array([0, 3, 4, 1, 4, 2, 0, 4], dtype=jnp.int32)   # label 4 (>K-1) = unlabeled
    priorlist = jnp.array([0.3, 0.2, 0.25, 0.15, 0.1], dtype=jnp.float32)

    obj, pu, ce = mpu_loss_index(outputs, labels, priorlist, indexlist, K, puW)
    jax.block_until_ready((obj, pu, ce))
    ref_obj, ref_pu, ref_ce = _reference_forward(
        np.asarray(outputs), np.asarray(labels), np.asarray(priorlist),
        list(indexlist), K, puW)
    np.testing.assert_allclose(float(obj), ref_obj, rtol=2e-4, atol=5e-5)
    np.testing.assert_allclose(float(pu[0]), ref_pu, rtol=2e-4, atol=5e-5)
    np.testing.assert_allclose(float(ce), ref_ce, rtol=2e-4, atol=5e-5)

    # ---- case 2: N not a multiple of the tile + multiple grid steps ---------
    # (block_n=128 forces 3 streaming tiles and exercises the tail mask)
    N2, C2, K2 = 300, 5, 4
    indexlist2 = (1, 3)
    outputs2 = jax.random.normal(k2, (N2, C2), dtype=jnp.float32)
    labels2 = jax.random.randint(k3, (N2,), 0, C2, dtype=jnp.int32)
    priorlist2 = jnp.array([0.15, 0.25, 0.2, 0.3, 0.1], dtype=jnp.float32)

    obj2, pu2v, ce2 = mpu_loss_index(outputs2, labels2, priorlist2, indexlist2,
                                     K2, puW, block_n=128)
    jax.block_until_ready((obj2, pu2v, ce2))
    r_obj2, r_pu2, r_ce2 = _reference_forward(
        np.asarray(outputs2), np.asarray(labels2), np.asarray(priorlist2),
        list(indexlist2), K2, puW)
    np.testing.assert_allclose(float(obj2), r_obj2, rtol=2e-4, atol=1e-4)
    np.testing.assert_allclose(float(pu2v[0]), r_pu2, rtol=2e-4, atol=1e-4)
    np.testing.assert_allclose(float(ce2), r_ce2, rtol=2e-4, atol=1e-4)

    print("KERNEL_OK")
</pallas_src>

<mosaic_0001>
module attributes {stable_mosaic.version = 11 : i64} {
  func.func @_mpu_partial_kernel(%arg0: i32, %arg1: memref<8x128xf32, #tpu.memory_space<vmem>>, %arg2: memref<1x128xi32, #tpu.memory_space<vmem>>, %arg3: memref<8x128xf32, #tpu.memory_space<vmem>>) attributes {dimension_semantics = [#tpu.dimension_semantics<arbitrary>], iteration_bounds = array<i64: 1>, scalar_prefetch = 0 : i64, scratch_operands = 0 : i64, tpu.core_type = #tpu.core_type<tc>, window_params = [{transform_indices = @transform_0, window_bounds = array<i64: 8, 128>}, {transform_indices = @transform_1, window_bounds = array<i64: 1, 128>}, {pipeline_mode = #tpu.pipeline_mode<synchronous>, transform_indices = @transform_2, window_bounds = array<i64: 8, 128>}]} {
    %c0_i32 = arith.constant 0 : i32
    %0 = arith.cmpi eq, %arg0, %c0_i32 : i32
    %1 = arith.extui %0 : i1 to i32
    %c0_i32_0 = arith.constant 0 : i32
    %2 = arith.cmpi ne, %1, %c0_i32_0 : i32
    scf.if %2 {
      %cst_29 = arith.constant 0.000000e+00 : f32
      %112 = vector.broadcast %cst_29 : f32 to vector<8x128xf32>
      %c0_30 = arith.constant 0 : index
      %c0_31 = arith.constant 0 : index
      %113 = vector.load %arg3[%c0_30, %c0_31] : memref<8x128xf32, #tpu.memory_space<vmem>>, vector<8x128xf32>
      tpu.vector_store %arg3[%c0_30, %c0_31], %112 {strides = array<i32>} : memref<8x128xf32, #tpu.memory_space<vmem>>, vector<8x128xf32>,
    } else {
    }
    %c0 = arith.constant 0 : index
    %c0_1 = arith.constant 0 : index
    %3 = vector.load %arg1[%c0, %c0_1] : memref<8x128xf32, #tpu.memory_space<vmem>>, vector<8x128xf32>
    %c0_2 = arith.constant 0 : index
    %c0_3 = arith.constant 0 : index
    %4 = vector.load %arg2[%c0_2, %c0_3] : memref<1x128xi32, #tpu.memory_space<vmem>>, vector<1x128xi32>
    %5 = tpu.iota {dimensions = array<i32: 1>} : vector<1x128xi32>
    %c128_i32 = arith.constant 128 : i32
    %6 = arith.muli %arg0, %c128_i32 : i32
    %c8_i32 = arith.constant 8 : i32
    %7 = arith.subi %c8_i32, %6 : i32
    %8 = vector.broadcast %7 : i32 to vector<1x128xi32>
    %9 = arith.cmpi slt, %5, %8 : vector<1x128xi32>
    %cst = arith.constant 1.000000e+00 : f32
    %cst_4 = arith.constant 0.000000e+00 : f32
    %10 = vector.broadcast %cst : f32 to vector<1x128xf32>
    %11 = vector.broadcast %cst_4 : f32 to vector<1x128xf32>
    %12 = arith.select %9, %10, %11 : vector<1x128xi1>, vector<1x128xf32>
    %c3_i32 = arith.constant 3 : i32
    %13 = vector.broadcast %c3_i32 : i32 to vector<1x128xi32>
    %14 = arith.cmpi sle, %4, %13 : vector<1x128xi32>
    %cst_5 = arith.constant 0.000000e+00 : f32
    %15 = vector.broadcast %cst_5 : f32 to vector<1x128xf32>
    %16 = arith.select %14, %12, %15 : vector<1x128xi1>, vector<1x128xf32>
    %17 = arith.subf %12, %16 : vector<1x128xf32>
    %cst_6 = arith.constant dense<0xFF800000> : vector<128xf32>
    %18 = vector.multi_reduction <maximumf>, %3, %cst_6 [0] : vector<8x128xf32> to vector<128xf32>
    %19 = vector.shape_cast %18 : vector<128xf32> to vector<1x128xf32>
    %20 = vector.broadcast %19 : vector<1x128xf32> to vector<8x128xf32>
    %21 = arith.subf %3, %20 : vector<8x128xf32>
    %22 = math.exp %21 : vector<8x128xf32>
    %cst_7 = arith.constant dense<0.000000e+00> : vector<128xf32>
    %23 = vector.multi_reduction <add>, %22, %cst_7 [0] : vector<8x128xf32> to vector<128xf32>
    %24 = vector.shape_cast %23 : vector<128xf32> to vector<1x128xf32>
    %25 = math.log %24 : vector<1x128xf32>
    %cst_8 = arith.constant 1.010000e+00 : f32
    %26 = vector.broadcast %cst_8 : f32 to vector<1x128xf32>
    %27 = arith.mulf %26, %24 : vector<1x128xf32>
    %28 = vector.broadcast %27 : vector<1x128xf32> to vector<8x128xf32>
    %29 = arith.subf %28, %22 : vector<8x128xf32>
    %30 = math.log %29 : vector<8x128xf32>
    %31 = vector.broadcast %25 : vector<1x128xf32> to vector<8x128xf32>
    %32 = arith.subf %30, %31 : vector<8x128xf32>
    %33 = tpu.iota {dimensions = array<i32: 0>} : vector<8x1xi32>
    %34 = vector.broadcast %33 : vector<8x1xi32> to vector<8x128xi32>
    %35 = vector.broadcast %4 : vector<1x128xi32> to vector<8x128xi32>
    %36 = arith.cmpi eq, %34, %35 : vector<8x128xi32>
    %37 = vector.broadcast %17 : vector<1x128xf32> to vector<8x128xf32>
    %38 = arith.mulf %32, %37 : vector<8x128xf32>
    %39 = vector.broadcast %16 : vector<1x128xf32> to vector<8x128xf32>
    %40 = arith.mulf %32, %39 : vector<8x128xf32>
    %cst_9 = arith.constant 0.000000e+00 : f32
    %41 = vector.broadcast %cst_9 : f32 to vector<8x128xf32>
    %42 = arith.select %36, %40, %41 : vector<8x128xi1>, vector<8x128xf32>
    %cst_10 = arith.constant 0.000000e+00 : f32
    %43 = vector.broadcast %cst_10 : f32 to vector<8x128xf32>
    %44 = arith.select %36, %3, %43 : vector<8x128xi1>, vector<8x128xf32>
    %45 = vector.broadcast %16 : vector<1x128xf32> to vector<8x128xf32>
    %46 = arith.mulf %44, %45 : vector<8x128xf32>
    %cst_11 = arith.constant dense<0.000000e+00> : vector<8xf32>
    %47 = vector.multi_reduction <add>, %38, %cst_11 [1] : vector<8x128xf32> to vector<8xf32>
    %48 = vector.shape_cast %47 : vector<8xf32> to vector<8x1xf32>
    %cst_12 = arith.constant dense<0.000000e+00> : vector<8xf32>
    %49 = vector.multi_reduction <add>, %40, %cst_12 [1] : vector<8x128xf32> to vector<8xf32>
    %50 = vector.shape_cast %49 : vector<8xf32> to vector<8x1xf32>
    %cst_13 = arith.constant dense<0.000000e+00> : vector<8xf32>
    %51 = vector.multi_reduction <add>, %42, %cst_13 [1] : vector<8x128xf32> to vector<8xf32>
    %52 = vector.shape_cast %51 : vector<8xf32> to vector<8x1xf32>
    %cst_14 = arith.constant dense<0.000000e+00> : vector<8xf32>
    %53 = vector.multi_reduction <add>, %46, %cst_14 [1] : vector<8x128xf32> to vector<8xf32>
    %54 = vector.shape_cast %53 : vector<8xf32> to vector<8x1xf32>
    %55 = arith.addf %19, %25 : vector<1x128xf32>
    %56 = arith.mulf %55, %16 : vector<1x128xf32>
    %57 = vector.shape_cast %56 : vector<1x128xf32> to vector<1x1x128xf32>
    %cst_15 = arith.constant dense<0.000000e+00> : vector<1xf32>
    %58 = vector.multi_reduction <add>, %57, %cst_15 [1, 2] : vector<1x1x128xf32> to vector<1xf32>
    %59 = vector.shape_cast %58 : vector<1xf32> to vector<1x1x1xf32>
    %60 = vector.extract %59[0, 0, 0] : f32 from vector<1x1x1xf32>
    %61 = vector.broadcast %60 : f32 to vector<1x1xf32>
    %62 = vector.shape_cast %16 : vector<1x128xf32> to vector<1x1x128xf32>
    %cst_16 = arith.constant dense<0.000000e+00> : vector<1xf32>
    %63 = vector.multi_reduction <add>, %62, %cst_16 [1, 2] : vector<1x1x128xf32> to vector<1xf32>
    %64 = vector.shape_cast %63 : vector<1xf32> to vector<1x1x1xf32>
    %65 = vector.extract %64[0, 0, 0] : f32 from vector<1x1x1xf32>
    %66 = vector.broadcast %65 : f32 to vector<1x1xf32>
    %67 = tpu.iota {dimensions = array<i32: 1>} : vector<8x128xi32>
    %c0_i32_17 = arith.constant 0 : i32
    %68 = vector.broadcast %c0_i32_17 : i32 to vector<8x128xi32>
    %69 = arith.cmpi eq, %67, %68 : vector<8x128xi32>
    %cst_18 = arith.constant 0.000000e+00 : f32
    %70 = vector.shape_cast %48 : vector<8x1xf32> to vector<8x1xf32>
    %71 = vector.broadcast %70 : vector<8x1xf32> to vector<8x128xf32>
    %72 = vector.broadcast %cst_18 : f32 to vector<8x128xf32>
    %73 = arith.select %69, %71, %72 : vector<8x128xi1>, vector<8x128xf32>
    %c1_i32 = arith.constant 1 : i32
    %74 = vector.broadcast %c1_i32 : i32 to vector<8x128xi32>
    %75 = arith.cmpi eq, %67, %74 : vector<8x128xi32>
    %cst_19 = arith.constant 0.000000e+00 : f32
    %76 = vector.shape_cast %50 : vector<8x1xf32> to vector<8x1xf32>
    %77 = vector.broadcast %76 : vector<8x1xf32> to vector<8x128xf32>
    %78 = vector.broadcast %cst_19 : f32 to vector<8x128xf32>
    %79 = arith.select %75, %77, %78 : vector<8x128xi1>, vector<8x128xf32>
    %80 = arith.addf %73, %79 : vector<8x128xf32>
    %c2_i32 = arith.constant 2 : i32
    %81 = vector.broadcast %c2_i32 : i32 to vector<8x128xi32>
    %82 = arith.cmpi eq, %67, %81 : vector<8x128xi32>
    %cst_20 = arith.constant 0.000000e+00 : f32
    %83 = vector.shape_cast %52 : vector<8x1xf32> to vector<8x1xf32>
    %84 = vector.broadcast %83 : vector<8x1xf32> to vector<8x128xf32>
    %85 = vector.broadcast %cst_20 : f32 to vector<8x128xf32>
    %86 = arith.select %82, %84, %85 : vector<8x128xi1>, vector<8x128xf32>
    %87 = arith.addf %80, %86 : vector<8x128xf32>
    %c3_i32_21 = arith.constant 3 : i32
    %88 = vector.broadcast %c3_i32_21 : i32 to vector<8x128xi32>
    %89 = arith.cmpi eq, %67, %88 : vector<8x128xi32>
    %cst_22 = arith.constant 0.000000e+00 : f32
    %90 = vector.shape_cast %54 : vector<8x1xf32> to vector<8x1xf32>
    %91 = vector.broadcast %90 : vector<8x1xf32> to vector<8x128xf32>
    %92 = vector.broadcast %cst_22 : f32 to vector<8x128xf32>
    %93 = arith.select %89, %91, %92 : vector<8x128xi1>, vector<8x128xf32>
    %94 = arith.addf %87, %93 : vector<8x128xf32>
    %c4_i32 = arith.constant 4 : i32
    %95 = vector.broadcast %c4_i32 : i32 to vector<8x128xi32>
    %96 = arith.cmpi eq, %67, %95 : vector<8x128xi32>
    %cst_23 = arith.constant 0.000000e+00 : f32
    %97 = vector.shape_cast %61 : vector<1x1xf32> to vector<1x1xf32>
    %98 = vector.broadcast %97 : vector<1x1xf32> to vector<8x128xf32>
    %99 = vector.broadcast %cst_23 : f32 to vector<8x128xf32>
    %100 = arith.select %96, %98, %99 : vector<8x128xi1>, vector<8x128xf32>
    %101 = arith.addf %94, %100 : vector<8x128xf32>
    %c5_i32 = arith.constant 5 : i32
    %102 = vector.broadcast %c5_i32 : i32 to vector<8x128xi32>
    %103 = arith.cmpi eq, %67, %102 : vector<8x128xi32>
    %cst_24 = arith.constant 0.000000e+00 : f32
    %104 = vector.shape_cast %66 : vector<1x1xf32> to vector<1x1xf32>
    %105 = vector.broadcast %104 : vector<1x1xf32> to vector<8x128xf32>
    %106 = vector.broadcast %cst_24 : f32 to vector<8x128xf32>
    %107 = arith.select %103, %105, %106 : vector<8x128xi1>, vector<8x128xf32>
    %108 = arith.addf %101, %107 : vector<8x128xf32>
    %c0_25 = arith.constant 0 : index
    %c0_26 = arith.constant 0 : index
    %109 = vector.load %arg3[%c0_25, %c0_26] : memref<8x128xf32, #tpu.memory_space<vmem>>, vector<8x128xf32>
    %110 = arith.addf %109, %108 : vector<8x128xf32>
    %c0_27 = arith.constant 0 : index
    %c0_28 = arith.constant 0 : index
    %111 = vector.load %arg3[%c0_27, %c0_28] : memref<8x128xf32, #tpu.memory_space<vmem>>, vector<8x128xf32>
    tpu.vector_store %arg3[%c0_27, %c0_28], %110 {strides = array<i32>} : memref<8x128xf32, #tpu.memory_space<vmem>>, vector<8x128xf32>,
    return
  }
  func.func @transform_0(%arg0: i32) -> (i32, i32) {
    %c0_i32 = arith.constant 0 : i32
    %c0_i32_0 = arith.constant 0 : i32
    return %c0_i32, %arg0 : i32, i32
  }
  func.func @transform_1(%arg0: i32) -> (i32, i32) {
    %c0_i32 = arith.constant 0 : i32
    %c0_i32_0 = arith.constant 0 : i32
    return %c0_i32, %arg0 : i32, i32
  }
  func.func @transform_2(%arg0: i32) -> (i32, i32) {
    %c0_i32 = arith.constant 0 : i32
    %c0_i32_0 = arith.constant 0 : i32
    %c0_i32_1 = arith.constant 0 : i32
    return %c0_i32, %c0_i32_0 : i32, i32
  }
}

</mosaic_0001>

<bundles_post_ra>
// kernel: mpu_loss_index.1
= control target key start
LH: loop header
LB: loop body
LE: loop exit
PB: predicated region body
PF: predicated region fallthrough
CT: control target
= control target key end

     0   :  { %v18_v14 = vlaneseq  ;;  %v140_v21 = vmov 0.0   ;;  %vm82_vm2 = vcmask 1040384   ;;  %s174_s0 = inlined_call_operand.vmem [shape: f32[8,128], index: 0, kind: input, shape index: {}]   ;;  %s175_s1 = inlined_call_operand.vmem [shape: s32[1,128], index: 1, kind: input, shape index: {}]   ;;  %s176_s2 = inlined_call_operand.vmem [shape: f32[8,128], index: 2, kind: output, shape index: {}]  }
   0x1   :  { %v16_v0 = vld [vmem:[%s174_s0] sm:$0xff] }
   0x2   :  { %v28_v1 = vrot.slane %v16_v0, 4  ;;  %v159_v17 = vand.u32 127, %v18_v14  ;;  %v17_v20 = vld [vmem:[%s175_s1] sm:$0x1]  ;;  %v51_v23 = vshrl.u32 %v18_v14, 7 }
   0x3   :  { %vm25_vm1 = vcmp.le.s32.totalorder %v17_v20, 3 }
   0x4   :  { %v29_v2 = vmax.f32 %v16_v0, %v28_v1  ;;  %vm23_vm0 = vcmp.lt.s32.totalorder %v159_v17, 8  ;;  %v54_v28 = vsub.s32 0, %v51_v23  ;;  %vm103_vm4 = vcmp.eq.s32.totalorder %v159_v17, 0 }
   0x5   :  { %v24_v22 = vsel %vm23_vm0, 1.0, %v140_v21  ;;  %vm105_vm5 = vcmp.eq.s32.totalorder %v159_v17, 1  ;;  %vm108_vm6 = vcmp.eq.s32.totalorder %v159_v17, 2  ;;  %vm111_vm7 = vcmp.eq.s32.totalorder %v159_v17, 3 }
   0x6   :  { %v30_v3 = vrot.slane %v29_v2, 2  ;;  %v26_v25 = vsel %vm25_vm1, %v24_v22, 0.0  ;;  %v55_v31 = vrot.slane %v17_v20, %v54_v28  ;;  %vm114_vm8 = vcmp.eq.s32.totalorder %v159_v17, 4 }
   0x7   :  { %v27_v27 = vsub.f32 %v24_v22, %v26_v25  ;;  %v66_v35 = vrot.slane %v26_v25, %v54_v28  ;;  %v93_v38 = vsel %vm82_vm2, %v26_v25, 0.0  ;;  %vm118_vm9 = vcmp.eq.s32.totalorder %v159_v17, 5 }
   0x8   :  { %v31_v4 = vmax.f32 %v29_v2, %v30_v3  ;;  %vm56_vm3 = vcmp.eq.s32.totalorder %v51_v23, %v55_v31 }
   0x9   :  { %v60_v34 = vrot.slane %v27_v27, %v54_v28  ;;  %v70_v41 = vsel %vm56_vm3, %v16_v0, 0.0 }
   0xa   :  { %v32_v5 = vrot.slane %v31_v4, 1  ;;  %v71_v43 = vmul.f32 %v70_v41, %v66_v35 }
   0xc   :  { %v33_v6 = vmax.f32 %v31_v4, %v32_v5 }
   0xe   :  { %v34_v7 = vsub.f32 %v16_v0, %v33_v6 }
  0x10   :  { %v35_v8 = vmul.f32 1.442695, %v34_v7 }
  0x12   :  { %134 = vpow2.f32 %v35_v8 }
  0x1c   :  { %v135_v9 = vpop.eup %134 }
  0x1d   :  { %v37_v10 = vrot.slane %v135_v9, 4 }
  0x1f   :  { %v38_v11 = vadd.f32 %v135_v9, %v37_v10 }
  0x21   :  { %v39_v12 = vrot.slane %v38_v11, 2 }
  0x23   :  { %v40_v13 = vadd.f32 %v39_v12, %v38_v11 }
  0x25   :  { %v41_v15 = vrot.slane %v40_v13, 1 }
  0x27   :  { %v42_v16 = vadd.f32 %v41_v15, %v40_v13 }
  0x29   :  { %136 = vlog2.f32 %v42_v16  ;;  %v45_v18 = vmul.f32 1.01, %v42_v16 }
  0x2b   :  { %v46_v19 = vsub.f32 %v45_v18, %v135_v9 }
  0x2d   :  { %138 = vlog2.f32 %v46_v19 }
  0x33   :  { %v137_v24 = vpop.eup %136 }
  0x34   :  { %v44_v26 = vmul.f32 0.6931472, %v137_v24 }
  0x36   :  { %v80_v29 = vadd.f32 %v44_v26, %v33_v6 }
  0x37   :  { %v139_v30 = vpop.eup %138 }
  0x38   :  { %v81_v32 = vmul.f32 %v80_v29, %v26_v25  ;;  %v48_v33 = vmul.f32 0.6931472, %v139_v30 }
  0x3a   :  { %v83_v36 = vsel %vm82_vm2, %v81_v32, 0.0  ;;  %v49_v37 = vsub.f32 %v48_v33, %v44_v26 }
  0x3b   :  { %84 = vadd.xlane.f32.xlu0 %v83_v36 }
  0x3c   :  { %v61_v39 = vmul.f32 %v60_v34, %v49_v37  ;;  %v68_v40 = vmul.f32 %v66_v35, %v49_v37 }
  0x3e   :  { %72 = vadd.xlane.f32.xlu1 %v61_v39  ;;  %v69_v42 = vsel %vm56_vm3, %v68_v40, 0.0 }
  0x3f   :  { %94 = vadd.xlane.f32.xlu0 %v93_v38 }
  0x42   :  { %74 = vadd.xlane.f32.xlu1 %v68_v40 }
  0x43   :  { %76 = vadd.xlane.f32.xlu0 %v69_v42 }
  0x46   :  { %78 = vadd.xlane.f32.xlu1 %v71_v43 }
  0xc8   :  { %v85_v44 = vpop.xlane.xlu0 %84 }
  0xc9   :  { %v86_v45 = vrot.slane %v85_v44, 4 }
  0xcb   :  { %v87_v46 = vadd.f32 %v86_v45, %v85_v44  ;;  %v73_v58 = vpop.xlane.xlu1 %72 }
  0xcc   :  { %v95_v47 = vpop.xlane.xlu0 %94  ;;  %v104_v60 = vsel %vm103_vm4, %v73_v58, 0.0 }
  0xcd   :  { %v88_v48 = vrot.slane %v87_v46, 2  ;;  %v96_v49 = vrot.slane %v95_v47, 4 }
  0xcf   :  { %v97_v50 = vadd.f32 %v96_v49, %v95_v47  ;;  %v89_v51 = vadd.f32 %v88_v48, %v87_v46  ;;  %v75_v59 = vpop.xlane.xlu1 %74 }
  0xd0   :  { %v106_v61 = vsel %vm105_vm5, %v75_v59, 0.0  ;;  %v77_v62 = vpop.xlane.xlu0 %76 }
  0xd1   :  { %v98_v52 = vrot.slane %v97_v50, 2  ;;  %v90_v53 = vrot.slane %v89_v51, 1  ;;  %v107_v63 = vadd.f32 %v106_v61, %v104_v60  ;;  %v109_v0 = vsel %vm108_vm6, %v77_v62, 0.0 }
  0xd3   :  { %v91_v54 = vadd.f32 %v90_v53, %v89_v51  ;;  %v99_v55 = vadd.f32 %v98_v52, %v97_v50  ;;  %v79_v1 = vpop.xlane.xlu1 %78  ;;  %v110_v2 = vadd.f32 %v109_v0, %v107_v63 }
  0xd4   :  { %v112_v3 = vsel %vm111_vm7, %v79_v1, 0.0 }
  0xd5   :  { %129 = vpush %v91_v54  ;;  %v100_v56 = vrot.slane %v99_v55, 1  ;;  %v113_v6 = vadd.f32 %v112_v3, %v110_v2 }
  0xd7   :  { %v101_v57 = vadd.f32 %v100_v56, %v99_v55 }
  0xd9   :  { %131 = vpush %v101_v57 }
 0x106   :  { %s130_s1 = spop %129 }
 0x107   :  { %v115_v4 = vstv %s130_s1 }
 0x108   :  { %v116_v5 = vsel %vm114_vm8, %v115_v4, 0.0 }
 0x109   :  { %v117_v7 = vadd.f32 %v116_v5, %v113_v6 }
 0x10a   :  { %s132_s12 = spop %131 }
 0x10b   :  { %v119_v8 = vstv %s132_s12 }
 0x10c   :  { %v120_v9 = vsel %vm118_vm9, %v119_v8, 0.0 }
 0x10d   :  { %v121_v10 = vadd.f32 %v120_v9, %v117_v7 }
 0x10f   :  { %124 = vst [vmem:[%s176_s2] sm:$0xff] %v121_v10 }

</bundles_post_ra>
